<compile_context>
chip_gen: v7x
topology: tpu7x:2x2x1
jax: 0.10.0
libtpu: 0.0.40
codegen_flags: <defaults>
</compile_context>

<pallas_src>
import jax
import jax.numpy as jnp
from jax.experimental import pallas as pl
from jax.experimental.pallas import tpu as pltpu


def _round_up(v, m):
    return (v + m - 1) // m * m


def _pad2(a, rows, cols):
    pr, pc = rows - a.shape[0], cols - a.shape[1]
    if pr == 0 and pc == 0:
        return a
    return jnp.pad(a, ((0, pr), (0, pc)))


def _tpu_vmem_capacity_bytes():
    try:
        return int(pltpu.get_tpu_info().vmem_capacity_bytes)
    except Exception:
        return 64 << 20  # conservative default (v7x per-TensorCore VMEM)


def _mlp_kernel(x_ref, w1_ref, b1_ref, w2_ref, b2_ref, w3_ref, b3_ref, o_ref):
    cdt = w1_ref.dtype                       # bf16 MXU dtype for fc1 / fc2
    x = x_ref[...].astype(cdt)               # cast inside the kernel (no wrapper pass)
    # fc1 + ReLU: bf16 MXU inputs, f32 accumulation, f32 bias/ReLU on the VPU.
    h = jnp.dot(x, w1_ref[...], preferred_element_type=jnp.float32)       # (tb, H_p)
    h = jnp.maximum(h + b1_ref[...], 0.0).astype(cdt)
    # fc2 + ReLU
    h = jnp.dot(h, w2_ref[...], preferred_element_type=jnp.float32)       # (tb, H_p)
    h = jnp.maximum(h + b2_ref[...], 0.0)                                 # keep f32
    # fc3: tiny projection kept in f32 for accuracy, lane-dense (tb, Out_p) slab
    # -> unmasked 128-wide vector stores.
    y = jnp.dot(h, w3_ref[...], preferred_element_type=jnp.float32)       # (tb, Out_p)
    o_ref[...] = (y + b3_ref[...]).astype(o_ref.dtype)


def prepare_params(w1, b1, w2, b2, w3, b3, compute_dtype=jnp.bfloat16):
    """One-time (init/cache time) pad + cast of the weights.

    Weights are stored pre-transposed as (in_features, out_features); every
    contraction / lane dimension is zero-padded to a multiple of 128 so all
    matmuls are lane-dense.  fc1/fc2 weights are cast to bf16 for the MXU,
    fc3 and all biases stay f32.
    """
    In, H = w1.shape
    Out = w3.shape[1]
    In_p, H_p, Out_p = (_round_up(d, 128) for d in (In, H, Out))

    w1p = _pad2(w1, In_p, H_p).astype(compute_dtype)
    w2p = _pad2(w2, H_p, H_p).astype(compute_dtype)
    w3p = _pad2(w3, H_p, Out_p).astype(jnp.float32)
    b1p = _pad2(b1.reshape(1, -1), 1, H_p).astype(jnp.float32)
    b2p = _pad2(b2.reshape(1, -1), 1, H_p).astype(jnp.float32)
    b3p = _pad2(b3.reshape(1, -1), 1, Out_p).astype(jnp.float32)

    dims = dict(In=In, H=H, Out=Out, In_p=In_p, H_p=H_p, Out_p=Out_p)
    return (w1p, b1p, w2p, b2p, w3p, b3p), dims


def _pick_tile_b(B, mxu_edge=256):
    """Batch tile: multiple of 16 (bf16 sublanes); >=2 grid steps for megacore
    once B is non-trivial; MXU-edge tiles for large B."""
    if B <= 32:
        return max(16, _round_up(B, 16))
    if B <= 2 * mxu_edge:
        return _round_up(-(-B // 2), 16)      # ceil(B/2) -> at least 2 grid steps
    return mxu_edge


def _build_mlp_call(tile_b, In_p, H_p, Out_p, B_p, out_dtype, vmem_limit,
                    single_buffer_weights):
    if single_buffer_weights:
        def resident(shape):
            return pl.BlockSpec(shape, lambda i: (0, 0),
                                pipeline_mode=pl.Buffered(1))
    else:
        def resident(shape):
            return pl.BlockSpec(shape, lambda i: (0, 0))

    return pl.pallas_call(
        _mlp_kernel,
        out_shape=jax.ShapeDtypeStruct((B_p, Out_p), out_dtype),
        grid_spec=pltpu.PrefetchScalarGridSpec(
            num_scalar_prefetch=0,
            grid=(B_p // tile_b,),
            in_specs=[
                pl.BlockSpec((tile_b, In_p), lambda i: (i, 0)),   # x tile (streams)
                resident((In_p, H_p)),                            # W1 (resident)
                resident((1, H_p)),                               # b1
                resident((H_p, H_p)),                             # W2 (resident)
                resident((1, H_p)),                               # b2
                resident((H_p, Out_p)),                           # W3 (resident, f32)
                resident((1, Out_p)),                             # b3
            ],
            out_specs=pl.BlockSpec((tile_b, Out_p), lambda i: (i, 0)),
        ),
        compiler_params=pltpu.CompilerParams(
            dimension_semantics=("parallel",),   # batch axis shards across TCs (v7x)
            vmem_limit_bytes=vmem_limit,
        ),
    )


def feedforward_pallas(x, prepared_params, dims, *, tile_b=None):
    """x: (B, In) f32.  prepared_params/dims from prepare_params()."""
    B, In = x.shape
    assert In == dims["In"], "input feature size mismatch"
    In_p, H_p, Out_p = dims["In_p"], dims["H_p"], dims["Out_p"]
    Out = dims["Out"]
    w1p, b1p, w2p, b2p, w3p, b3p = prepared_params

    if tile_b is None:
        tile_b = _pick_tile_b(B)
    tile_b = max(16, _round_up(min(tile_b, _round_up(B, 16)), 16))
    B_p = _round_up(B, tile_b)

    # Pad x only when actually needed; the bf16 cast happens inside the kernel.
    xp = _pad2(x, B_p, In_p) if (B_p != B or In_p != In) else x

    # --- VMEM budget (actual bytes): 1x resident weights, 2x streamed tiles,
    #     live f32 intermediates, plus fixed headroom; clamp to chip capacity.
    c_sz = jnp.dtype(w1p.dtype).itemsize
    x_sz = jnp.dtype(x.dtype).itemsize
    o_sz = jnp.dtype(x.dtype).itemsize
    resident_bytes = ((In_p * H_p + H_p * H_p) * c_sz      # W1, W2 (bf16, 1x)
                      + H_p * Out_p * 4                    # W3 (f32, 1x)
                      + (2 * H_p + Out_p) * 4)             # biases (f32, 1x)
    streamed_bytes = 2 * tile_b * In_p * x_sz + 2 * tile_b * Out_p * o_sz
    live_bytes = 3 * tile_b * H_p * 4
    vmem_cap = _tpu_vmem_capacity_bytes()
    vmem_limit = int(min(resident_bytes + streamed_bytes + live_bytes + (4 << 20),
                         vmem_cap - (8 << 20)))
    vmem_limit = max(vmem_limit, 8 << 20)
    # TODO(synk): if resident_bytes alone exceeds the VMEM budget (very large H
    # on v7x), add a K-tiled fc2 path (second "arbitrary" grid axis + f32
    # accumulator scratch) instead of relying on fully-resident weights.

    args = (xp, w1p, b1p, w2p, b2p, w3p, b3p)
    try:
        out_p = _build_mlp_call(tile_b, In_p, H_p, Out_p, B_p, x.dtype,
                                vmem_limit, single_buffer_weights=True)(*args)
    except Exception:
        # Fallback if this JAX build rejects single-buffered (Buffered(1))
        # resident operands: use the default pipelining.
        out_p = _build_mlp_call(tile_b, In_p, H_p, Out_p, B_p, x.dtype,
                                vmem_limit, single_buffer_weights=False)(*args)

    # Strip batch / output-lane padding only when it was added.
    if B_p != B or Out_p != Out:
        out_p = out_p[:B, :Out]
    return out_p


def init_params(key, input_size, hidden_size, output_size=1, dtype=jnp.float32):
    """nn.Linear-style U(-1/sqrt(fan_in), 1/sqrt(fan_in)) init.
    Weights stored pre-transposed as (in_features, out_features)."""
    keys = jax.random.split(key, 6)

    def linear(kw, kb, fan_in, fan_out):
        bound = 1.0 / jnp.sqrt(fan_in)
        w = jax.random.uniform(kw, (fan_in, fan_out), dtype, -bound, bound)
        b = jax.random.uniform(kb, (1, fan_out), dtype, -bound, bound)
        return w, b

    w1, b1 = linear(keys[0], keys[1], input_size, hidden_size)
    w2, b2 = linear(keys[2], keys[3], hidden_size, hidden_size)
    w3, b3 = linear(keys[4], keys[5], hidden_size, output_size)
    return w1, b1, w2, b2, w3, b3


if __name__ == "__main__":
    # Small synthetic config consistent with the module's forward.
    batch, input_size, hidden_size, output_size = 16, 32, 64, 1

    key = jax.random.PRNGKey(0)
    kx, kp = jax.random.split(key)
    x = jax.random.normal(kx, (batch, input_size), dtype=jnp.float32)
    w1, b1, w2, b2, w3, b3 = init_params(kp, input_size, hidden_size, output_size)

    # One-time weight prep (pad + cast), then the fused kernel call.
    prepared, dims = prepare_params(w1, b1, w2, b2, w3, b3)
    out = feedforward_pallas(x, prepared, dims)
    out = jax.block_until_ready(out)

    # Reference check (pure JAX, f32). fc1/fc2 use bf16 MXU inputs with f32
    # accumulation; fc3 stays f32 => modest tolerance.
    ref = jnp.maximum(x @ w1 + b1, 0.0)
    ref = jnp.maximum(ref @ w2 + b2, 0.0)
    ref = ref @ w3 + b3
    assert out.shape == (batch, output_size)
    assert jnp.allclose(out, ref, atol=5e-2, rtol=5e-2)

    print("KERNEL_OK")
</pallas_src>

<mosaic_0001>
module attributes {stable_mosaic.version = 11 : i64} {
  func.func @_mlp_kernel(%arg0: i32, %arg1: memref<16x128xf32, #tpu.memory_space<vmem>>, %arg2: memref<128x128xbf16, #tpu.memory_space<vmem>>, %arg3: memref<1x128xf32, #tpu.memory_space<vmem>>, %arg4: memref<128x128xbf16, #tpu.memory_space<vmem>>, %arg5: memref<1x128xf32, #tpu.memory_space<vmem>>, %arg6: memref<128x128xf32, #tpu.memory_space<vmem>>, %arg7: memref<1x128xf32, #tpu.memory_space<vmem>>, %arg8: memref<16x128xf32, #tpu.memory_space<vmem>>) attributes {dimension_semantics = [#tpu.dimension_semantics<parallel>], iteration_bounds = array<i64: 1>, scalar_prefetch = 0 : i64, scratch_operands = 0 : i64, tpu.core_type = #tpu.core_type<tc>, window_params = [{transform_indices = @transform_0, window_bounds = array<i64: 16, 128>}, {pipeline_mode = #tpu.pipeline_mode<synchronous>, transform_indices = @transform_1, window_bounds = array<i64: 128, 128>}, {pipeline_mode = #tpu.pipeline_mode<synchronous>, transform_indices = @transform_2, window_bounds = array<i64: 1, 128>}, {pipeline_mode = #tpu.pipeline_mode<synchronous>, transform_indices = @transform_3, window_bounds = array<i64: 128, 128>}, {pipeline_mode = #tpu.pipeline_mode<synchronous>, transform_indices = @transform_4, window_bounds = array<i64: 1, 128>}, {pipeline_mode = #tpu.pipeline_mode<synchronous>, transform_indices = @transform_5, window_bounds = array<i64: 128, 128>}, {pipeline_mode = #tpu.pipeline_mode<synchronous>, transform_indices = @transform_6, window_bounds = array<i64: 1, 128>}, {transform_indices = @transform_7, window_bounds = array<i64: 16, 128>}]} {
    %c0 = arith.constant 0 : index
    %c0_0 = arith.constant 0 : index
    %0 = vector.load %arg1[%c0, %c0_0] : memref<16x128xf32, #tpu.memory_space<vmem>>, vector<16x128xf32>
    %1 = arith.truncf %0 : vector<16x128xf32> to vector<16x128xbf16>
    %c0_1 = arith.constant 0 : index
    %c0_2 = arith.constant 0 : index
    %2 = vector.load %arg2[%c0_1, %c0_2] : memref<128x128xbf16, #tpu.memory_space<vmem>>, vector<128x128xbf16>
    %cst = arith.constant dense<0.000000e+00> : vector<16x128xf32>
    %3 = tpu.matmul %1, %2, %cst {dimension_numbers = #tpu.dot_dimension_numbers<[1], [0], [0], [1], [0, 0, 1, 1], [], []>} : vector<16x128xbf16>, vector<128x128xbf16>, vector<16x128xf32> -> vector<16x128xf32>
    %c0_3 = arith.constant 0 : index
    %c0_4 = arith.constant 0 : index
    %4 = vector.load %arg3[%c0_3, %c0_4] : memref<1x128xf32, #tpu.memory_space<vmem>>, vector<1x128xf32>
    %5 = vector.broadcast %4 : vector<1x128xf32> to vector<16x128xf32>
    %6 = arith.addf %3, %5 : vector<16x128xf32>
    %cst_5 = arith.constant 0.000000e+00 : f32
    %7 = vector.broadcast %cst_5 : f32 to vector<16x128xf32>
    %8 = arith.maximumf %6, %7 : vector<16x128xf32>
    %9 = arith.truncf %8 : vector<16x128xf32> to vector<16x128xbf16>
    %c0_6 = arith.constant 0 : index
    %c0_7 = arith.constant 0 : index
    %10 = vector.load %arg4[%c0_6, %c0_7] : memref<128x128xbf16, #tpu.memory_space<vmem>>, vector<128x128xbf16>
    %cst_8 = arith.constant dense<0.000000e+00> : vector<16x128xf32>
    %11 = tpu.matmul %9, %10, %cst_8 {dimension_numbers = #tpu.dot_dimension_numbers<[1], [0], [0], [1], [0, 0, 1, 1], [], []>} : vector<16x128xbf16>, vector<128x128xbf16>, vector<16x128xf32> -> vector<16x128xf32>
    %c0_9 = arith.constant 0 : index
    %c0_10 = arith.constant 0 : index
    %12 = vector.load %arg5[%c0_9, %c0_10] : memref<1x128xf32, #tpu.memory_space<vmem>>, vector<1x128xf32>
    %13 = vector.broadcast %12 : vector<1x128xf32> to vector<16x128xf32>
    %14 = arith.addf %11, %13 : vector<16x128xf32>
    %cst_11 = arith.constant 0.000000e+00 : f32
    %15 = vector.broadcast %cst_11 : f32 to vector<16x128xf32>
    %16 = arith.maximumf %14, %15 : vector<16x128xf32>
    %c0_12 = arith.constant 0 : index
    %c0_13 = arith.constant 0 : index
    %17 = vector.load %arg6[%c0_12, %c0_13] : memref<128x128xf32, #tpu.memory_space<vmem>>, vector<128x128xf32>
    %cst_14 = arith.constant dense<0.000000e+00> : vector<16x128xf32>
    %18 = tpu.matmul %16, %17, %cst_14 {dimension_numbers = #tpu.dot_dimension_numbers<[1], [0], [0], [1], [0, 0, 1, 1], [], []>} : vector<16x128xf32>, vector<128x128xf32>, vector<16x128xf32> -> vector<16x128xf32>
    %c0_15 = arith.constant 0 : index
    %c0_16 = arith.constant 0 : index
    %19 = vector.load %arg7[%c0_15, %c0_16] : memref<1x128xf32, #tpu.memory_space<vmem>>, vector<1x128xf32>
    %20 = vector.broadcast %19 : vector<1x128xf32> to vector<16x128xf32>
    %21 = arith.addf %18, %20 : vector<16x128xf32>
    %c0_17 = arith.constant 0 : index
    %c0_18 = arith.constant 0 : index
    %22 = vector.load %arg8[%c0_17, %c0_18] : memref<16x128xf32, #tpu.memory_space<vmem>>, vector<16x128xf32>
    tpu.vector_store %arg8[%c0_17, %c0_18], %21 {strides = array<i32>} : memref<16x128xf32, #tpu.memory_space<vmem>>, vector<16x128xf32>,
    return
  }
  func.func @transform_0(%arg0: i32) -> (i32, i32) {
    %c0_i32 = arith.constant 0 : i32
    %c0_i32_0 = arith.constant 0 : i32
    return %arg0, %c0_i32 : i32, i32
  }
  func.func @transform_1(%arg0: i32) -> (i32, i32) {
    %c0_i32 = arith.constant 0 : i32
    %c0_i32_0 = arith.constant 0 : i32
    %c0_i32_1 = arith.constant 0 : i32
    return %c0_i32, %c0_i32_0 : i32, i32
  }
  func.func @transform_2(%arg0: i32) -> (i32, i32) {
    %c0_i32 = arith.constant 0 : i32
    %c0_i32_0 = arith.constant 0 : i32
    %c0_i32_1 = arith.constant 0 : i32
    return %c0_i32, %c0_i32_0 : i32, i32
  }
  func.func @transform_3(%arg0: i32) -> (i32, i32) {
    %c0_i32 = arith.constant 0 : i32
    %c0_i32_0 = arith.constant 0 : i32
    %c0_i32_1 = arith.constant 0 : i32
    return %c0_i32, %c0_i32_0 : i32, i32
  }
  func.func @transform_4(%arg0: i32) -> (i32, i32) {
    %c0_i32 = arith.constant 0 : i32
    %c0_i32_0 = arith.constant 0 : i32
    %c0_i32_1 = arith.constant 0 : i32
    return %c0_i32, %c0_i32_0 : i32, i32
  }
  func.func @transform_5(%arg0: i32) -> (i32, i32) {
    %c0_i32 = arith.constant 0 : i32
    %c0_i32_0 = arith.constant 0 : i32
    %c0_i32_1 = arith.constant 0 : i32
    return %c0_i32, %c0_i32_0 : i32, i32
  }
  func.func @transform_6(%arg0: i32) -> (i32, i32) {
    %c0_i32 = arith.constant 0 : i32
    %c0_i32_0 = arith.constant 0 : i32
    %c0_i32_1 = arith.constant 0 : i32
    return %c0_i32, %c0_i32_0 : i32, i32
  }
  func.func @transform_7(%arg0: i32) -> (i32, i32) {
    %c0_i32 = arith.constant 0 : i32
    %c0_i32_0 = arith.constant 0 : i32
    return %arg0, %c0_i32 : i32, i32
  }
}

module attributes {stable_mosaic.version = 11 : i64} {
  func.func @_mlp_kernel(%arg0: i32, %arg1: memref<16x128xf32, #tpu.memory_space<vmem>>, %arg2: memref<128x128xbf16, #tpu.memory_space<vmem>>, %arg3: memref<1x128xf32, #tpu.memory_space<vmem>>, %arg4: memref<128x128xbf16, #tpu.memory_space<vmem>>, %arg5: memref<1x128xf32, #tpu.memory_space<vmem>>, %arg6: memref<128x128xf32, #tpu.memory_space<vmem>>, %arg7: memref<1x128xf32, #tpu.memory_space<vmem>>, %arg8: memref<16x128xf32, #tpu.memory_space<vmem>>) attributes {dimension_semantics = [#tpu.dimension_semantics<parallel>], iteration_bounds = array<i64: 1>, scalar_prefetch = 0 : i64, scratch_operands = 0 : i64, tpu.core_type = #tpu.core_type<tc>, window_params = [{transform_indices = @transform_0, window_bounds = array<i64: 16, 128>}, {pipeline_mode = #tpu.pipeline_mode<synchronous>, transform_indices = @transform_1, window_bounds = array<i64: 128, 128>}, {pipeline_mode = #tpu.pipeline_mode<synchronous>, transform_indices = @transform_2, window_bounds = array<i64: 1, 128>}, {pipeline_mode = #tpu.pipeline_mode<synchronous>, transform_indices = @transform_3, window_bounds = array<i64: 128, 128>}, {pipeline_mode = #tpu.pipeline_mode<synchronous>, transform_indices = @transform_4, window_bounds = array<i64: 1, 128>}, {pipeline_mode = #tpu.pipeline_mode<synchronous>, transform_indices = @transform_5, window_bounds = array<i64: 128, 128>}, {pipeline_mode = #tpu.pipeline_mode<synchronous>, transform_indices = @transform_6, window_bounds = array<i64: 1, 128>}, {transform_indices = @transform_7, window_bounds = array<i64: 16, 128>}]} {
    %c0 = arith.constant 0 : index
    %c0_0 = arith.constant 0 : index
    %0 = vector.load %arg1[%c0, %c0_0] : memref<16x128xf32, #tpu.memory_space<vmem>>, vector<16x128xf32>
    %1 = arith.truncf %0 : vector<16x128xf32> to vector<16x128xbf16>
    %c0_1 = arith.constant 0 : index
    %c0_2 = arith.constant 0 : index
    %2 = vector.load %arg2[%c0_1, %c0_2] : memref<128x128xbf16, #tpu.memory_space<vmem>>, vector<128x128xbf16>
    %cst = arith.constant dense<0.000000e+00> : vector<16x128xf32>
    %3 = tpu.matmul %1, %2, %cst {dimension_numbers = #tpu.dot_dimension_numbers<[1], [0], [0], [1], [0, 0, 1, 1], [], []>} : vector<16x128xbf16>, vector<128x128xbf16>, vector<16x128xf32> -> vector<16x128xf32>
    %c0_3 = arith.constant 0 : index
    %c0_4 = arith.constant 0 : index
    %4 = vector.load %arg3[%c0_3, %c0_4] : memref<1x128xf32, #tpu.memory_space<vmem>>, vector<1x128xf32>
    %5 = vector.broadcast %4 : vector<1x128xf32> to vector<16x128xf32>
    %6 = arith.addf %3, %5 : vector<16x128xf32>
    %cst_5 = arith.constant 0.000000e+00 : f32
    %7 = vector.broadcast %cst_5 : f32 to vector<16x128xf32>
    %8 = arith.maximumf %6, %7 : vector<16x128xf32>
    %9 = arith.truncf %8 : vector<16x128xf32> to vector<16x128xbf16>
    %c0_6 = arith.constant 0 : index
    %c0_7 = arith.constant 0 : index
    %10 = vector.load %arg4[%c0_6, %c0_7] : memref<128x128xbf16, #tpu.memory_space<vmem>>, vector<128x128xbf16>
    %cst_8 = arith.constant dense<0.000000e+00> : vector<16x128xf32>
    %11 = tpu.matmul %9, %10, %cst_8 {dimension_numbers = #tpu.dot_dimension_numbers<[1], [0], [0], [1], [0, 0, 1, 1], [], []>} : vector<16x128xbf16>, vector<128x128xbf16>, vector<16x128xf32> -> vector<16x128xf32>
    %c0_9 = arith.constant 0 : index
    %c0_10 = arith.constant 0 : index
    %12 = vector.load %arg5[%c0_9, %c0_10] : memref<1x128xf32, #tpu.memory_space<vmem>>, vector<1x128xf32>
    %13 = vector.broadcast %12 : vector<1x128xf32> to vector<16x128xf32>
    %14 = arith.addf %11, %13 : vector<16x128xf32>
    %cst_11 = arith.constant 0.000000e+00 : f32
    %15 = vector.broadcast %cst_11 : f32 to vector<16x128xf32>
    %16 = arith.maximumf %14, %15 : vector<16x128xf32>
    %c0_12 = arith.constant 0 : index
    %c0_13 = arith.constant 0 : index
    %17 = vector.load %arg6[%c0_12, %c0_13] : memref<128x128xf32, #tpu.memory_space<vmem>>, vector<128x128xf32>
    %cst_14 = arith.constant dense<0.000000e+00> : vector<16x128xf32>
    %18 = tpu.matmul %16, %17, %cst_14 {dimension_numbers = #tpu.dot_dimension_numbers<[1], [0], [0], [1], [0, 0, 1, 1], [], []>} : vector<16x128xf32>, vector<128x128xf32>, vector<16x128xf32> -> vector<16x128xf32>
    %c0_15 = arith.constant 0 : index
    %c0_16 = arith.constant 0 : index
    %19 = vector.load %arg7[%c0_15, %c0_16] : memref<1x128xf32, #tpu.memory_space<vmem>>, vector<1x128xf32>
    %20 = vector.broadcast %19 : vector<1x128xf32> to vector<16x128xf32>
    %21 = arith.addf %18, %20 : vector<16x128xf32>
    %c0_17 = arith.constant 0 : index
    %c0_18 = arith.constant 0 : index
    %22 = vector.load %arg8[%c0_17, %c0_18] : memref<16x128xf32, #tpu.memory_space<vmem>>, vector<16x128xf32>
    tpu.vector_store %arg8[%c0_17, %c0_18], %21 {strides = array<i32>} : memref<16x128xf32, #tpu.memory_space<vmem>>, vector<16x128xf32>,
    return
  }
  func.func @transform_0(%arg0: i32) -> (i32, i32) {
    %c0_i32 = arith.constant 0 : i32
    %c0_i32_0 = arith.constant 0 : i32
    return %arg0, %c0_i32 : i32, i32
  }
  func.func @transform_1(%arg0: i32) -> (i32, i32) {
    %c0_i32 = arith.constant 0 : i32
    %c0_i32_0 = arith.constant 0 : i32
    %c0_i32_1 = arith.constant 0 : i32
    return %c0_i32, %c0_i32_0 : i32, i32
  }
  func.func @transform_2(%arg0: i32) -> (i32, i32) {
    %c0_i32 = arith.constant 0 : i32
    %c0_i32_0 = arith.constant 0 : i32
    %c0_i32_1 = arith.constant 0 : i32
    return %c0_i32, %c0_i32_0 : i32, i32
  }
  func.func @transform_3(%arg0: i32) -> (i32, i32) {
    %c0_i32 = arith.constant 0 : i32
    %c0_i32_0 = arith.constant 0 : i32
    %c0_i32_1 = arith.constant 0 : i32
    return %c0_i32, %c0_i32_0 : i32, i32
  }
  func.func @transform_4(%arg0: i32) -> (i32, i32) {
    %c0_i32 = arith.constant 0 : i32
    %c0_i32_0 = arith.constant 0 : i32
    %c0_i32_1 = arith.constant 0 : i32
    return %c0_i32, %c0_i32_0 : i32, i32
  }
  func.func @transform_5(%arg0: i32) -> (i32, i32) {
    %c0_i32 = arith.constant 0 : i32
    %c0_i32_0 = arith.constant 0 : i32
    %c0_i32_1 = arith.constant 0 : i32
    return %c0_i32, %c0_i32_0 : i32, i32
  }
  func.func @transform_6(%arg0: i32) -> (i32, i32) {
    %c0_i32 = arith.constant 0 : i32
    %c0_i32_0 = arith.constant 0 : i32
    %c0_i32_1 = arith.constant 0 : i32
    return %c0_i32, %c0_i32_0 : i32, i32
  }
  func.func @transform_7(%arg0: i32) -> (i32, i32) {
    %c0_i32 = arith.constant 0 : i32
    %c0_i32_0 = arith.constant 0 : i32
    return %arg0, %c0_i32 : i32, i32
  }
}

</mosaic_0001>

<bundles_post_ra>
// kernel: tpu_custom_call.1
= control target key start
LH: loop header
LB: loop body
LE: loop exit
PB: predicated region body
PF: predicated region fallthrough
CT: control target
= control target key end

     0   :  { %12 = vsyncpa [#allocation3], 0  ;;  %s883_s0 = inlined_call_operand.hbm [shape: f32[16,128], index: 0, kind: input, shape index: {}]   ;;  %s884_s1 = inlined_call_operand.hbm [shape: bf16[128,128], index: 1, kind: input, shape index: {}]   ;;  %s885_s2 = inlined_call_operand.vmem [shape: f32[1,128], index: 2, kind: input, shape index: {}]   ;;  %s886_s3 = inlined_call_operand.hbm [shape: bf16[128,128], index: 3, kind: input, shape index: {}]   ;;  %s887_s4 = inlined_call_operand.vmem [shape: f32[1,128], index: 4, kind: input, shape index: {}]   ;;  %s888_s5 = inlined_call_operand.hbm [shape: f32[128,128], index: 5, kind: input, shape index: {}]   ;;  %s889_s6 = inlined_call_operand.vmem [shape: f32[1,128], index: 6, kind: input, shape index: {}]   ;;  %s890_s7 = inlined_call_operand.hbm [shape: f32[16,128], index: 7, kind: output, shape index: {}]  }
   0x1   :  { %13 = vsyncpa [#allocation6], 0 }
   0x2   :  { %14 = vsyncpa [#allocation9], 0 }
   0x3   :  { %15 = vsyncpa [#allocation4], 0  ;;  %s741_s24 = smov [#allocation5]   ;;  %s623_s28 = scalar_lea.hbm %s884_s1, 1024 }
   0x4   :  { %s33_s25 = sshll.u32 %s741_s24, 4  ;;  %p624_p0 = scmp.ne.s32.totalorder %s884_s1, %s623_s28  ;;  %s34_s25 = int_to_ptr.vmem [resolvable:$true] %s33_s25 }
   0x5   :  { %p627_p1 = scmp.lt.u32.totalorder %s623_s28, %s884_s1 }
   0x7   :  { %p629_p2 = pnand %p627_p1, %p624_p0 }
   0x9   :  { %632 = shalt.err (!%p629_p2)
}
   0xa   :  { %s633_s10 = scalar_lea.vmem %s34_s25, 1024  ;;  %p638_p4 = scmp.lt.s32.totalorder %s34_s25, %s34_s25 }
   0xb   :  { %p634_p3 = scmp.ne.s32.totalorder %s34_s25, %s633_s10  ;;  %p639_p5 = scmp.lt.s32.totalorder %s633_s10, %s633_s10 }
   0xd   :  { %p640_p6 = por %p639_p5, %p638_p4 }
   0xf   :  { %p641_p7 = pnand %p640_p6, %p634_p3 }
  0x11   :  { %644 = shalt.err (!%p641_p7)
}
  0x12   :  { %s742_s11 = smov 64   ;;  %s743_s12 = smov 4  }
  0x13   :  { %39 = dma.hbm_to_vmem [thread:$0]  %s884_s1, 1024, %s34_s25, [#allocation6], %s742_s11, %s742_s11, %s743_s12  }
  0x14   :  { %s744_s15 = smov [#allocation2]   ;;  %s645_s19 = scalar_lea.hbm %s883_s0, 256 }
  0x15   :  { %s21_s16 = sshll.u32 %s744_s15, 4  ;;  %p646_p8 = scmp.ne.s32.totalorder %s883_s0, %s645_s19  ;;  %s22_s16 = int_to_ptr.vmem [resolvable:$true] %s21_s16 }
  0x16   :  { %p649_p9 = scmp.lt.u32.totalorder %s645_s19, %s883_s0 }
  0x18   :  { %p651_p10 = pnand %p649_p9, %p646_p8 }
  0x1a   :  { %654 = shalt.err (!%p651_p10)
}
  0x1b   :  { %s655_s24 = scalar_lea.vmem %s22_s16, 256  ;;  %p660_p12 = scmp.lt.s32.totalorder %s22_s16, %s22_s16 }
  0x1c   :  { %p656_p11 = scmp.ne.s32.totalorder %s22_s16, %s655_s24  ;;  %p661_p13 = scmp.lt.s32.totalorder %s655_s24, %s655_s24 }
  0x1e   :  { %p662_p0 = por %p661_p13, %p660_p12 }
  0x20   :  { %p663_p1 = pnand %p662_p0, %p656_p11 }
  0x22   :  { %666 = shalt.err (!%p663_p1)
}
  0x23   :  { %s745_s1 = smov 128   ;;  %s746_s25 = smov 8  }
  0x24   :  { %27 = dma.hbm_to_vmem [thread:$0]  %s883_s0, 256, %s22_s16, [#allocation3], %s745_s1, %s745_s1, %s746_s25  }
  0x25   :  { %s747_s28 = smov [#allocation7]   ;;  %s748_s30 = smov [#allocation8]  }
  0x26   :  { %s47_s29 = sshll.u32 %s747_s28, 4  ;;  %s61_s8 = sshll.u32 %s748_s30, 4  ;;  %s48_s29 = int_to_ptr.vmem [resolvable:$true] %s47_s29  ;;  %s822_s8 = int_to_ptr.vmem [resolvable:$true] %s61_s8 }
  0x27   :  { %s667_s13 = scalar_lea.hbm %s886_s3, 1024 }
  0x28   :  { %p668_p2 = scmp.ne.s32.totalorder %s886_s3, %s667_s13  ;;  %p671_p3 = scmp.lt.u32.totalorder %s667_s13, %s886_s3 }
  0x2a   :  { %p673_p4 = pnand %p671_p3, %p668_p2 }
  0x2c   :  { %676 = shalt.err (!%p673_p4)
}
  0x2d   :  { %s677_s0 = scalar_lea.vmem %s48_s29, 1024  ;;  %p682_p6 = scmp.lt.s32.totalorder %s48_s29, %s48_s29 }
  0x2e   :  { %p678_p5 = scmp.ne.s32.totalorder %s48_s29, %s677_s0  ;;  %p683_p7 = scmp.lt.s32.totalorder %s677_s0, %s677_s0 }
  0x30   :  { %p684_p8 = por %p683_p7, %p682_p6 }
  0x32   :  { %p685_p9 = pnand %p684_p8, %p678_p5 }
  0x34   :  { %688 = shalt.err (!%p685_p9)
}
  0x35   :  { %53 = dma.hbm_to_vmem [thread:$0]  %s886_s3, 1024, %s48_s29, [#allocation6], %s742_s11, %s742_s11, %s743_s12  }
  0x36   :  { %s689_s22 = scalar_lea.hbm %s888_s5, 2048 }
  0x37   :  { %p690_p10 = scmp.ne.s32.totalorder %s888_s5, %s689_s22  ;;  %p693_p11 = scmp.lt.u32.totalorder %s689_s22, %s888_s5 }
  0x39   :  { %p695_p12 = pnand %p693_p11, %p690_p10 }
  0x3b   :  { %698 = shalt.err (!%p695_p12)
}
  0x3c   :  { %s699_s28 = scalar_lea.vmem %s822_s8, 2048  ;;  %p704_p0 = scmp.lt.s32.totalorder %s822_s8, %s822_s8 }
  0x3d   :  { %p700_p13 = scmp.ne.s32.totalorder %s822_s8, %s699_s28  ;;  %p705_p1 = scmp.lt.s32.totalorder %s699_s28, %s699_s28 }
  0x3f   :  { %p706_p2 = por %p705_p1, %p704_p0 }
  0x41   :  { %p707_p3 = pnand %p706_p2, %p700_p13 }
  0x43   :  { %710 = shalt.err (!%p707_p3)
}
  0x44   :  { %67 = dma.hbm_to_vmem [thread:$0]  %s888_s5, 2048, %s822_s8, [#allocation9], %s745_s1, %s745_s1, %s746_s25  }
  0x45   :  { %733 = dma.done.wait [#allocation3], 256  }
  0x46   :  { %734 = vsyncadd [#allocation3], 4294967040 }
  0x47   :  { %735 = dma.done.wait [#allocation6], 2048  }
  0x48   :  { %736 = vsyncadd [#allocation6], 4294965248 }
  0x49   :  { %737 = dma.done.wait [#allocation9], 2048  }
  0x4a   :  { %738 = vsyncadd [#allocation9], 4294965248  ;;  %v749_v0 = vmov 0.0   ;;  %vm750_vm0 = vmmov 0   ;;  %v607_v1 = vld [vmem:[#allocation5] sm:$0xff]   ;;  %v608_v2 = vld [vmem:[#allocation5 + $0x8] sm:$0xff]  }
  0x4b   :  { %489 = vmatprep.subr.bf16.mxu0 %v749_v0  ;;  %505 = vmatprep.mubr.msk.bf16.mxu0 %vm750_vm0, %v749_v0  ;;  %v609_v3 = vld [vmem:[#allocation5 + $0x10] sm:$0xff]   ;;  %v615_v4 = vld [vmem:[#allocation7] sm:$0xff]   ;;  %v610_v5 = vld [vmem:[#allocation5 + $0x18] sm:$0xff]   ;;  %s751_s9 = smov [#allocation10]  }
  0x4c   :  { %509 = vmatprep.subr.bf16.mxu1 %v749_v0  ;;  %525 = vmatprep.mubr.msk.bf16.mxu1 %vm750_vm0, %v749_v0  ;;  %v616_v6 = vld [vmem:[#allocation7 + $0x8] sm:$0xff]   ;;  %v611_v7 = vld [vmem:[#allocation5 + $0x20] sm:$0xff]   ;;  %v617_v8 = vld [vmem:[#allocation7 + $0x10] sm:$0xff]   ;;  %s420_s10 = sshll.u32 %s751_s9, 4  ;;  %s421_s10 = int_to_ptr.vmem [resolvable:$true] %s420_s10 }
  0x4d   :  { %490 = vmatpush3.bf16.msra.mxu0 %v607_v1  ;;  %510 = vmatpush3.bf16.msra.mxu1 %v615_v4  ;;  %v612_v9 = vld [vmem:[#allocation5 + $0x28] sm:$0xff]   ;;  %v618_v10 = vld [vmem:[#allocation7 + $0x18] sm:$0xff]   ;;  %v613_v11 = vld [vmem:[#allocation5 + $0x30] sm:$0xff]   ;;  %p716_p5 = scmp.lt.s32.totalorder %s421_s10, %s421_s10 }
  0x4e   :  { %491 = vmatprep.subr.bf16.mxu0 %v749_v0  ;;  %511 = vmatprep.subr.bf16.mxu1 %v749_v0  ;;  %v619_v12 = vld [vmem:[#allocation7 + $0x20] sm:$0xff]   ;;  %v614_v13 = vld [vmem:[#allocation5 + $0x38] sm:$0xff]   ;;  %v83_v14 = vld [vmem:[#allocation2] sm:$0xff] }
  0x4f   :  { %v84_v15 = vld [vmem:[#allocation2 + $0x8] sm:$0xff]  ;;  %v620_v16 = vld [vmem:[#allocation7 + $0x28] sm:$0xff]   ;;  %v621_v18 = vld [vmem:[#allocation7 + $0x30] sm:$0xff]  }
  0x50   :  { %v85_v17 = vpack.c.bf16 %v84_v15, %v83_v14  ;;  %v622_v19 = vld [vmem:[#allocation7 + $0x38] sm:$0xff]   ;;  %v315_v20 = vld [vmem:[#allocation8] sm:$0xff]  ;;  %v316_v21 = vld [vmem:[#allocation8 + $0x8] sm:$0xff] }
  0x51   :  { %492 = vmatpush3.bf16.msra.mxu0 %v608_v2  ;;  %512 = vmatpush3.bf16.msra.mxu1 %v616_v6  ;;  %v317_v22 = vld [vmem:[#allocation8 + $0x10] sm:$0xff]  ;;  %v564_v23 = vpack.c.bf16 %v316_v21, %v315_v20  ;;  %v318_v24 = vld [vmem:[#allocation8 + $0x18] sm:$0xff]  ;;  %v319_v26 = vld [vmem:[#allocation8 + $0x20] sm:$0xff] }
  0x52   :  { %493 = vmatprep.subr.bf16.mxu0 %v749_v0  ;;  %513 = vmatprep.subr.bf16.mxu1 %v749_v0  ;;  %v568_v25 = vpack.c.bf16 %v318_v24, %v317_v22  ;;  %v320_v27 = vld [vmem:[#allocation8 + $0x28] sm:$0xff]  ;;  %v321_v29 = vld [vmem:[#allocation8 + $0x30] sm:$0xff]  ;;  %v322_v30 = vld [vmem:[#allocation8 + $0x38] sm:$0xff] }
  0x53   :  { %v572_v28 = vpack.c.bf16 %v320_v27, %v319_v26  ;;  %v576_v31 = vpack.c.bf16 %v322_v30, %v321_v29  ;;  %v323_v32 = vld [vmem:[#allocation8 + $0x40] sm:$0xff]  ;;  %v324_v33 = vld [vmem:[#allocation8 + $0x48] sm:$0xff]  ;;  %v325_v35 = vld [vmem:[#allocation8 + $0x50] sm:$0xff] }
  0x54   :  { %v580_v34 = vpack.c.bf16 %v324_v33, %v323_v32  ;;  %v326_v36 = vld [vmem:[#allocation8 + $0x58] sm:$0xff]  ;;  %v327_v38 = vld [vmem:[#allocation8 + $0x60] sm:$0xff]  ;;  %v328_v39 = vld [vmem:[#allocation8 + $0x68] sm:$0xff] }
  0x55   :  { %494 = vmatpush3.bf16.msra.mxu0 %v609_v3  ;;  %514 = vmatpush3.bf16.msra.mxu1 %v617_v8  ;;  %v584_v37 = vpack.c.bf16 %v326_v36, %v325_v35  ;;  %v588_v40 = vpack.c.bf16 %v328_v39, %v327_v38  ;;  %v434_v41 = vld [vmem:[%s885_s2] ss:$0 sm:$0xff]  ;;  %v330_v52 = vld [vmem:[#allocation8 + $0x78] sm:$0xff] }
  0x56   :  { %495 = vmatprep.subr.bf16.mxu0 %v749_v0  ;;  %515 = vmatprep.subr.bf16.mxu1 %v749_v0  ;;  %v329_v51 = vld [vmem:[#allocation8 + $0x70] sm:$0xff] }
  0x57   :  { %v592_v53 = vpack.c.bf16 %v330_v52, %v329_v51  ;;  %v443_v54 = vld [vmem:[%s887_s4] ss:$0 sm:$0xff]  ;;  %s711_s4 = scalar_lea.vmem %s421_s10, 256 }
  0x58   :  { %v452_v63 = vld [vmem:[%s889_s6] ss:$0 sm:$0xff]  ;;  %p712_p4 = scmp.ne.s32.totalorder %s421_s10, %s711_s4  ;;  %p717_p6 = scmp.lt.s32.totalorder %s711_s4, %s711_s4 }
  0x59   :  { %496 = vmatpush3.bf16.msra.mxu0 %v610_v5  ;;  %516 = vmatpush3.bf16.msra.mxu1 %v618_v10 }
  0x5a   :  { %497 = vmatprep.subr.bf16.mxu0 %v749_v0  ;;  %517 = vmatprep.subr.bf16.mxu1 %v749_v0  ;;  %p718_p7 = por %p717_p6, %p716_p5 }
  0x5c   :  { %p719_p8 = pnand %p718_p7, %p712_p4 }
  0x5d   :  { %498 = vmatpush3.bf16.msra.mxu0 %v611_v7  ;;  %518 = vmatpush3.bf16.msra.mxu1 %v619_v12 }
  0x5e   :  { %499 = vmatprep.subr.bf16.mxu0 %v749_v0  ;;  %519 = vmatprep.subr.bf16.mxu1 %v749_v0 }
  0x61   :  { %500 = vmatpush3.bf16.msra.mxu0 %v612_v9  ;;  %520 = vmatpush3.bf16.msra.mxu1 %v620_v16 }
  0x62   :  { %501 = vmatprep.subr.bf16.mxu0 %v749_v0  ;;  %521 = vmatprep.subr.bf16.mxu1 %v749_v0 }
  0x65   :  { %502 = vmatpush3.bf16.msra.mxu0 %v613_v11  ;;  %522 = vmatpush3.bf16.msra.mxu1 %v621_v18 }
  0x66   :  { %503 = vmatprep.subr.bf16.mxu0 %v749_v0  ;;  %523 = vmatprep.subr.bf16.mxu1 %v749_v0 }
  0x69   :  { %504 = vmatpush3.bf16.msra.mxu0 %v614_v13  ;;  %524 = vmatpush3.bf16.msra.mxu1 %v622_v19 }
  0x6a   :  { %565 = vmatprep.subr.bf16.mxu0 %v564_v23 }
  0x6c   :  { %506 = vmatmul.mubr.bf16.vlgmr.msra.gmra.mrb[0].mxu0 %v85_v17 }
  0x6d   :  { %567 = vmatpush3.bf16.msra.mxu0 %v564_v23 }
  0x6e   :  { %569 = vmatprep.subr.bf16.mxu0 %v568_v25 }
  0x71   :  { %571 = vmatpush3.bf16.msra.mxu0 %v568_v25 }
  0x72   :  { %573 = vmatprep.subr.bf16.mxu0 %v572_v28 }
  0x75   :  { %575 = vmatpush3.bf16.msra.mxu0 %v572_v28 }
  0x76   :  { %577 = vmatprep.subr.bf16.mxu0 %v576_v31 }
  0x79   :  { %579 = vmatpush3.bf16.msra.mxu0 %v576_v31 }
  0x7a   :  { %581 = vmatprep.subr.bf16.mxu0 %v580_v34 }
  0x7d   :  { %583 = vmatpush3.bf16.msra.mxu0 %v580_v34 }
  0x7e   :  { %585 = vmatprep.subr.bf16.mxu0 %v584_v37 }
  0x81   :  { %587 = vmatpush3.bf16.msra.mxu0 %v584_v37 }
  0x82   :  { %589 = vmatprep.subr.bf16.mxu0 %v588_v40 }
  0x85   :  { %591 = vmatpush3.bf16.msra.mxu0 %v588_v40 }
  0x86   :  { %593 = vmatprep.subr.bf16.mxu0 %v592_v53 }
  0x89   :  { %595 = vmatpush3.bf16.msra.mxu0 %v592_v53 }
 0x13f   :  { %v191_v42 = vpop.f32.mrb[0].mxu0 }
 0x140   :  { %v192_v43 = vadd.f32 %v434_v41, %v191_v42  ;;  %v507_v44 = vpop.f32.mrb[1].mxu0 }
 0x141   :  { %v194_v45 = vpop.f32.mrb[2].mxu0 }
 0x142   :  { %v195_v46 = vadd.f32 %v434_v41, %v194_v45  ;;  %v508_v47 = vpop.f32.mrb[3].mxu0  ;;  %v198_v48 = vmax.f32 %v192_v43, 0.0 }
 0x144   :  { %v199_v49 = vmax.f32 %v195_v46, 0.0 }
 0x146   :  { %v200_v50 = vpack.c.bf16 %v199_v49, %v198_v48 }
 0x148   :  { %526 = vmatmul.mubr.bf16.vlgmr.msra.gmra.mrb[0].mxu1 %v200_v50 }
 0x21b   :  { %v306_v55 = vpop.f32.mrb[0].mxu1 }
 0x21c   :  { %v307_v56 = vadd.f32 %v443_v54, %v306_v55  ;;  %v527_v57 = vpop.f32.mrb[1].mxu1 }
 0x21d   :  { %v309_v58 = vpop.f32.mrb[2].mxu1 }
 0x21e   :  { %v313_v59 = vmax.f32 %v307_v56, 0.0  ;;  %v310_v60 = vadd.f32 %v443_v54, %v309_v58  ;;  %v528_v61 = vpop.f32.mrb[3].mxu1 }
 0x220   :  { %v314_v62 = vmax.f32 %v310_v60, 0.0  ;;  %561 = vmatprep.mubr.f32.mxu0 %v313_v59 }
 0x222   :  { %562 = vmatmul.mubr.f32.vlgmr.msra.gmra.mrb[4].mxu0 %v314_v62 }
 0x2f5   :  { %v563_v0 = vpop.f32.mrb[4].mxu0 }
 0x2f6   :  { %v410_v1 = vadd.f32 %v563_v0, %v452_v63  ;;  %v404_v2 = vpop.f32.mrb[5].mxu0 }
 0x2f7   :  { %v405_v3 = vadd.f32 %v452_v63, %v404_v2 }
 0x2f8   :  { %414 = vst [vmem:[#allocation10 + $0x8] sm:$0xff] %v410_v1 }
 0x2f9   :  { %413 = vst [vmem:[#allocation10] sm:$0xff] %v405_v3 }
 0x2fa   :  { %722 = shalt.err (!%p719_p8)
}
 0x2fb   :  { %s723_s6 = scalar_lea.hbm %s890_s7, 256 }
 0x2fc   :  { %p724_p9 = scmp.ne.s32.totalorder %s890_s7, %s723_s6  ;;  %p727_p10 = scmp.lt.u32.totalorder %s723_s6, %s890_s7 }
 0x2fe   :  { %p729_p11 = pnand %p727_p10, %p724_p9 }
 0x300   :  { %732 = shalt.err (!%p729_p11)
}
 0x301   :  { %426 = dma.vmem_to_hbm [thread:$0]  %s421_s10, 256, %s890_s7, [#allocation4], %s745_s1, %s745_s1, %s746_s25  }
 0x302   :  { %739 = dma.done.wait [#allocation4], 256  }
 0x303   :  { %740 = vsyncadd [#allocation4], 4294967040 }
 0x304   :  { %430 = vsyncpa [#allocation3], 1 }
 0x305   :  { %431 = vsyncpa [#allocation6], 1 }
 0x306   :  { %432 = vsyncpa [#allocation9], 1 }
 0x307   :  { %433 = vsyncpa [#allocation4], 1 }

// kernel: tpu_custom_call.1
= control target key start
LH: loop header
LB: loop body
LE: loop exit
PB: predicated region body
PF: predicated region fallthrough
CT: control target
= control target key end

     0   :  { %12 = vsyncpa [#allocation3], 0  ;;  %s883_s0 = inlined_call_operand.hbm [shape: f32[16,128], index: 0, kind: input, shape index: {}]   ;;  %s884_s1 = inlined_call_operand.hbm [shape: bf16[128,128], index: 1, kind: input, shape index: {}]   ;;  %s885_s2 = inlined_call_operand.vmem [shape: f32[1,128], index: 2, kind: input, shape index: {}]   ;;  %s886_s3 = inlined_call_operand.hbm [shape: bf16[128,128], index: 3, kind: input, shape index: {}]   ;;  %s887_s4 = inlined_call_operand.vmem [shape: f32[1,128], index: 4, kind: input, shape index: {}]   ;;  %s888_s5 = inlined_call_operand.hbm [shape: f32[128,128], index: 5, kind: input, shape index: {}]   ;;  %s889_s6 = inlined_call_operand.vmem [shape: f32[1,128], index: 6, kind: input, shape index: {}]   ;;  %s890_s7 = inlined_call_operand.hbm [shape: f32[16,128], index: 7, kind: output, shape index: {}]  }
   0x1   :  { %13 = vsyncpa [#allocation6], 0 }
   0x2   :  { %14 = vsyncpa [#allocation9], 0 }
   0x3   :  { %15 = vsyncpa [#allocation4], 0  ;;  %s741_s24 = smov [#allocation5]   ;;  %s623_s28 = scalar_lea.hbm %s884_s1, 1024 }
   0x4   :  { %s33_s25 = sshll.u32 %s741_s24, 4  ;;  %p624_p0 = scmp.ne.s32.totalorder %s884_s1, %s623_s28  ;;  %s34_s25 = int_to_ptr.vmem [resolvable:$true] %s33_s25 }
   0x5   :  { %p627_p1 = scmp.lt.u32.totalorder %s623_s28, %s884_s1 }
   0x7   :  { %p629_p2 = pnand %p627_p1, %p624_p0 }
   0x9   :  { %632 = shalt.err (!%p629_p2)
}
   0xa   :  { %s633_s10 = scalar_lea.vmem %s34_s25, 1024  ;;  %p638_p4 = scmp.lt.s32.totalorder %s34_s25, %s34_s25 }
   0xb   :  { %p634_p3 = scmp.ne.s32.totalorder %s34_s25, %s633_s10  ;;  %p639_p5 = scmp.lt.s32.totalorder %s633_s10, %s633_s10 }
   0xd   :  { %p640_p6 = por %p639_p5, %p638_p4 }
   0xf   :  { %p641_p7 = pnand %p640_p6, %p634_p3 }
  0x11   :  { %644 = shalt.err (!%p641_p7)
}
  0x12   :  { %s742_s11 = smov 64   ;;  %s743_s12 = smov 4  }
  0x13   :  { %39 = dma.hbm_to_vmem [thread:$0]  %s884_s1, 1024, %s34_s25, [#allocation6], %s742_s11, %s742_s11, %s743_s12  }
  0x14   :  { %s744_s15 = smov [#allocation2]   ;;  %s645_s19 = scalar_lea.hbm %s883_s0, 256 }
  0x15   :  { %s21_s16 = sshll.u32 %s744_s15, 4  ;;  %p646_p8 = scmp.ne.s32.totalorder %s883_s0, %s645_s19  ;;  %s22_s16 = int_to_ptr.vmem [resolvable:$true] %s21_s16 }
  0x16   :  { %p649_p9 = scmp.lt.u32.totalorder %s645_s19, %s883_s0 }
  0x18   :  { %p651_p10 = pnand %p649_p9, %p646_p8 }
  0x1a   :  { %654 = shalt.err (!%p651_p10)
}
  0x1b   :  { %s655_s24 = scalar_lea.vmem %s22_s16, 256  ;;  %p660_p12 = scmp.lt.s32.totalorder %s22_s16, %s22_s16 }
  0x1c   :  { %p656_p11 = scmp.ne.s32.totalorder %s22_s16, %s655_s24  ;;  %p661_p13 = scmp.lt.s32.totalorder %s655_s24, %s655_s24 }
  0x1e   :  { %p662_p0 = por %p661_p13, %p660_p12 }
  0x20   :  { %p663_p1 = pnand %p662_p0, %p656_p11 }
  0x22   :  { %666 = shalt.err (!%p663_p1)
}
  0x23   :  { %s745_s1 = smov 128   ;;  %s746_s25 = smov 8  }
  0x24   :  { %27 = dma.hbm_to_vmem [thread:$0]  %s883_s0, 256, %s22_s16, [#allocation3], %s745_s1, %s745_s1, %s746_s25  }
  0x25   :  { %s747_s28 = smov [#allocation7]   ;;  %s748_s30 = smov [#allocation8]  }
  0x26   :  { %s47_s29 = sshll.u32 %s747_s28, 4  ;;  %s61_s8 = sshll.u32 %s748_s30, 4  ;;  %s48_s29 = int_to_ptr.vmem [resolvable:$true] %s47_s29  ;;  %s822_s8 = int_to_ptr.vmem [resolvable:$true] %s61_s8 }
  0x27   :  { %s667_s13 = scalar_lea.hbm %s886_s3, 1024 }
  0x28   :  { %p668_p2 = scmp.ne.s32.totalorder %s886_s3, %s667_s13  ;;  %p671_p3 = scmp.lt.u32.totalorder %s667_s13, %s886_s3 }
  0x2a   :  { %p673_p4 = pnand %p671_p3, %p668_p2 }
  0x2c   :  { %676 = shalt.err (!%p673_p4)
}
  0x2d   :  { %s677_s0 = scalar_lea.vmem %s48_s29, 1024  ;;  %p682_p6 = scmp.lt.s32.totalorder %s48_s29, %s48_s29 }
  0x2e   :  { %p678_p5 = scmp.ne.s32.totalorder %s48_s29, %s677_s0  ;;  %p683_p7 = scmp.lt.s32.totalorder %s677_s0, %s677_s0 }
  0x30   :  { %p684_p8 = por %p683_p7, %p682_p6 }
  0x32   :  { %p685_p9 = pnand %p684_p8, %p678_p5 }
  0x34   :  { %688 = shalt.err (!%p685_p9)
}
  0x35   :  { %53 = dma.hbm_to_vmem [thread:$0]  %s886_s3, 1024, %s48_s29, [#allocation6], %s742_s11, %s742_s11, %s743_s12  }
  0x36   :  { %s689_s22 = scalar_lea.hbm %s888_s5, 2048 }
  0x37   :  { %p690_p10 = scmp.ne.s32.totalorder %s888_s5, %s689_s22  ;;  %p693_p11 = scmp.lt.u32.totalorder %s689_s22, %s888_s5 }
  0x39   :  { %p695_p12 = pnand %p693_p11, %p690_p10 }
  0x3b   :  { %698 = shalt.err (!%p695_p12)
}
  0x3c   :  { %s699_s28 = scalar_lea.vmem %s822_s8, 2048  ;;  %p704_p0 = scmp.lt.s32.totalorder %s822_s8, %s822_s8 }
  0x3d   :  { %p700_p13 = scmp.ne.s32.totalorder %s822_s8, %s699_s28  ;;  %p705_p1 = scmp.lt.s32.totalorder %s699_s28, %s699_s28 }
  0x3f   :  { %p706_p2 = por %p705_p1, %p704_p0 }
  0x41   :  { %p707_p3 = pnand %p706_p2, %p700_p13 }
  0x43   :  { %710 = shalt.err (!%p707_p3)
}
  0x44   :  { %67 = dma.hbm_to_vmem [thread:$0]  %s888_s5, 2048, %s822_s8, [#allocation9], %s745_s1, %s745_s1, %s746_s25  }
  0x45   :  { %733 = dma.done.wait [#allocation3], 256  }
  0x46   :  { %734 = vsyncadd [#allocation3], 4294967040 }
  0x47   :  { %735 = dma.done.wait [#allocation6], 2048  }
  0x48   :  { %736 = vsyncadd [#allocation6], 4294965248 }
  0x49   :  { %737 = dma.done.wait [#allocation9], 2048  }
  0x4a   :  { %738 = vsyncadd [#allocation9], 4294965248  ;;  %v749_v0 = vmov 0.0   ;;  %vm750_vm0 = vmmov 0   ;;  %v607_v1 = vld [vmem:[#allocation5] sm:$0xff]   ;;  %v608_v2 = vld [vmem:[#allocation5 + $0x8] sm:$0xff]  }
  0x4b   :  { %489 = vmatprep.subr.bf16.mxu0 %v749_v0  ;;  %505 = vmatprep.mubr.msk.bf16.mxu0 %vm750_vm0, %v749_v0  ;;  %v609_v3 = vld [vmem:[#allocation5 + $0x10] sm:$0xff]   ;;  %v615_v4 = vld [vmem:[#allocation7] sm:$0xff]   ;;  %v610_v5 = vld [vmem:[#allocation5 + $0x18] sm:$0xff]   ;;  %s751_s9 = smov [#allocation10]  }
  0x4c   :  { %509 = vmatprep.subr.bf16.mxu1 %v749_v0  ;;  %525 = vmatprep.mubr.msk.bf16.mxu1 %vm750_vm0, %v749_v0  ;;  %v616_v6 = vld [vmem:[#allocation7 + $0x8] sm:$0xff]   ;;  %v611_v7 = vld [vmem:[#allocation5 + $0x20] sm:$0xff]   ;;  %v617_v8 = vld [vmem:[#allocation7 + $0x10] sm:$0xff]   ;;  %s420_s10 = sshll.u32 %s751_s9, 4  ;;  %s421_s10 = int_to_ptr.vmem [resolvable:$true] %s420_s10 }
  0x4d   :  { %490 = vmatpush3.bf16.msra.mxu0 %v607_v1  ;;  %510 = vmatpush3.bf16.msra.mxu1 %v615_v4  ;;  %v612_v9 = vld [vmem:[#allocation5 + $0x28] sm:$0xff]   ;;  %v618_v10 = vld [vmem:[#allocation7 + $0x18] sm:$0xff]   ;;  %v613_v11 = vld [vmem:[#allocation5 + $0x30] sm:$0xff]   ;;  %p716_p5 = scmp.lt.s32.totalorder %s421_s10, %s421_s10 }
  0x4e   :  { %491 = vmatprep.subr.bf16.mxu0 %v749_v0  ;;  %511 = vmatprep.subr.bf16.mxu1 %v749_v0  ;;  %v619_v12 = vld [vmem:[#allocation7 + $0x20] sm:$0xff]   ;;  %v614_v13 = vld [vmem:[#allocation5 + $0x38] sm:$0xff]   ;;  %v83_v14 = vld [vmem:[#allocation2] sm:$0xff] }
  0x4f   :  { %v84_v15 = vld [vmem:[#allocation2 + $0x8] sm:$0xff]  ;;  %v620_v16 = vld [vmem:[#allocation7 + $0x28] sm:$0xff]   ;;  %v621_v18 = vld [vmem:[#allocation7 + $0x30] sm:$0xff]  }
  0x50   :  { %v85_v17 = vpack.c.bf16 %v84_v15, %v83_v14  ;;  %v622_v19 = vld [vmem:[#allocation7 + $0x38] sm:$0xff]   ;;  %v315_v20 = vld [vmem:[#allocation8] sm:$0xff]  ;;  %v316_v21 = vld [vmem:[#allocation8 + $0x8] sm:$0xff] }
  0x51   :  { %492 = vmatpush3.bf16.msra.mxu0 %v608_v2  ;;  %512 = vmatpush3.bf16.msra.mxu1 %v616_v6  ;;  %v317_v22 = vld [vmem:[#allocation8 + $0x10] sm:$0xff]  ;;  %v564_v23 = vpack.c.bf16 %v316_v21, %v315_v20  ;;  %v318_v24 = vld [vmem:[#allocation8 + $0x18] sm:$0xff]  ;;  %v319_v26 = vld [vmem:[#allocation8 + $0x20] sm:$0xff] }
  0x52   :  { %493 = vmatprep.subr.bf16.mxu0 %v749_v0  ;;  %513 = vmatprep.subr.bf16.mxu1 %v749_v0  ;;  %v568_v25 = vpack.c.bf16 %v318_v24, %v317_v22  ;;  %v320_v27 = vld [vmem:[#allocation8 + $0x28] sm:$0xff]  ;;  %v321_v29 = vld [vmem:[#allocation8 + $0x30] sm:$0xff]  ;;  %v322_v30 = vld [vmem:[#allocation8 + $0x38] sm:$0xff] }
  0x53   :  { %v572_v28 = vpack.c.bf16 %v320_v27, %v319_v26  ;;  %v576_v31 = vpack.c.bf16 %v322_v30, %v321_v29  ;;  %v323_v32 = vld [vmem:[#allocation8 + $0x40] sm:$0xff]  ;;  %v324_v33 = vld [vmem:[#allocation8 + $0x48] sm:$0xff]  ;;  %v325_v35 = vld [vmem:[#allocation8 + $0x50] sm:$0xff] }
  0x54   :  { %v580_v34 = vpack.c.bf16 %v324_v33, %v323_v32  ;;  %v326_v36 = vld [vmem:[#allocation8 + $0x58] sm:$0xff]  ;;  %v327_v38 = vld [vmem:[#allocation8 + $0x60] sm:$0xff]  ;;  %v328_v39 = vld [vmem:[#allocation8 + $0x68] sm:$0xff] }
  0x55   :  { %494 = vmatpush3.bf16.msra.mxu0 %v609_v3  ;;  %514 = vmatpush3.bf16.msra.mxu1 %v617_v8  ;;  %v584_v37 = vpack.c.bf16 %v326_v36, %v325_v35  ;;  %v588_v40 = vpack.c.bf16 %v328_v39, %v327_v38  ;;  %v434_v41 = vld [vmem:[%s885_s2] ss:$0 sm:$0xff]  ;;  %v330_v52 = vld [vmem:[#allocation8 + $0x78] sm:$0xff] }
  0x56   :  { %495 = vmatprep.subr.bf16.mxu0 %v749_v0  ;;  %515 = vmatprep.subr.bf16.mxu1 %v749_v0  ;;  %v329_v51 = vld [vmem:[#allocation8 + $0x70] sm:$0xff] }
  0x57   :  { %v592_v53 = vpack.c.bf16 %v330_v52, %v329_v51  ;;  %v443_v54 = vld [vmem:[%s887_s4] ss:$0 sm:$0xff]  ;;  %s711_s4 = scalar_lea.vmem %s421_s10, 256 }
  0x58   :  { %v452_v63 = vld [vmem:[%s889_s6] ss:$0 sm:$0xff]  ;;  %p712_p4 = scmp.ne.s32.totalorder %s421_s10, %s711_s4  ;;  %p717_p6 = scmp.lt.s32.totalorder %s711_s4, %s711_s4 }
  0x59   :  { %496 = vmatpush3.bf16.msra.mxu0 %v610_v5  ;;  %516 = vmatpush3.bf16.msra.mxu1 %v618_v10 }
  0x5a   :  { %497 = vmatprep.subr.bf16.mxu0 %v749_v0  ;;  %517 = vmatprep.subr.bf16.mxu1 %v749_v0  ;;  %p718_p7 = por %p717_p6, %p716_p5 }
  0x5c   :  { %p719_p8 = pnand %p718_p7, %p712_p4 }
  0x5d   :  { %498 = vmatpush3.bf16.msra.mxu0 %v611_v7  ;;  %518 = vmatpush3.bf16.msra.mxu1 %v619_v12 }
  0x5e   :  { %499 = vmatprep.subr.bf16.mxu0 %v749_v0  ;;  %519 = vmatprep.subr.bf16.mxu1 %v749_v0 }
  0x61   :  { %500 = vmatpush3.bf16.msra.mxu0 %v612_v9  ;;  %520 = vmatpush3.bf16.msra.mxu1 %v620_v16 }
  0x62   :  { %501 = vmatprep.subr.bf16.mxu0 %v749_v0  ;;  %521 = vmatprep.subr.bf16.mxu1 %v749_v0 }
  0x65   :  { %502 = vmatpush3.bf16.msra.mxu0 %v613_v11  ;;  %522 = vmatpush3.bf16.msra.mxu1 %v621_v18 }
  0x66   :  { %503 = vmatprep.subr.bf16.mxu0 %v749_v0  ;;  %523 = vmatprep.subr.bf16.mxu1 %v749_v0 }
  0x69   :  { %504 = vmatpush3.bf16.msra.mxu0 %v614_v13  ;;  %524 = vmatpush3.bf16.msra.mxu1 %v622_v19 }
  0x6a   :  { %565 = vmatprep.subr.bf16.mxu0 %v564_v23 }
  0x6c   :  { %506 = vmatmul.mubr.bf16.vlgmr.msra.gmra.mrb[0].mxu0 %v85_v17 }
  0x6d   :  { %567 = vmatpush3.bf16.msra.mxu0 %v564_v23 }
  0x6e   :  { %569 = vmatprep.subr.bf16.mxu0 %v568_v25 }
  0x71   :  { %571 = vmatpush3.bf16.msra.mxu0 %v568_v25 }
  0x72   :  { %573 = vmatprep.subr.bf16.mxu0 %v572_v28 }
  0x75   :  { %575 = vmatpush3.bf16.msra.mxu0 %v572_v28 }
  0x76   :  { %577 = vmatprep.subr.bf16.mxu0 %v576_v31 }
  0x79   :  { %579 = vmatpush3.bf16.msra.mxu0 %v576_v31 }
  0x7a   :  { %581 = vmatprep.subr.bf16.mxu0 %v580_v34 }
  0x7d   :  { %583 = vmatpush3.bf16.msra.mxu0 %v580_v34 }
  0x7e   :  { %585 = vmatprep.subr.bf16.mxu0 %v584_v37 }
  0x81   :  { %587 = vmatpush3.bf16.msra.mxu0 %v584_v37 }
  0x82   :  { %589 = vmatprep.subr.bf16.mxu0 %v588_v40 }
  0x85   :  { %591 = vmatpush3.bf16.msra.mxu0 %v588_v40 }
  0x86   :  { %593 = vmatprep.subr.bf16.mxu0 %v592_v53 }
  0x89   :  { %595 = vmatpush3.bf16.msra.mxu0 %v592_v53 }
 0x13f   :  { %v191_v42 = vpop.f32.mrb[0].mxu0 }
 0x140   :  { %v192_v43 = vadd.f32 %v434_v41, %v191_v42  ;;  %v507_v44 = vpop.f32.mrb[1].mxu0 }
 0x141   :  { %v194_v45 = vpop.f32.mrb[2].mxu0 }
 0x142   :  { %v195_v46 = vadd.f32 %v434_v41, %v194_v45  ;;  %v508_v47 = vpop.f32.mrb[3].mxu0  ;;  %v198_v48 = vmax.f32 %v192_v43, 0.0 }
 0x144   :  { %v199_v49 = vmax.f32 %v195_v46, 0.0 }
 0x146   :  { %v200_v50 = vpack.c.bf16 %v199_v49, %v198_v48 }
 0x148   :  { %526 = vmatmul.mubr.bf16.vlgmr.msra.gmra.mrb[0].mxu1 %v200_v50 }
 0x21b   :  { %v306_v55 = vpop.f32.mrb[0].mxu1 }
 0x21c   :  { %v307_v56 = vadd.f32 %v443_v54, %v306_v55  ;;  %v527_v57 = vpop.f32.mrb[1].mxu1 }
 0x21d   :  { %v309_v58 = vpop.f32.mrb[2].mxu1 }
 0x21e   :  { %v313_v59 = vmax.f32 %v307_v56, 0.0  ;;  %v310_v60 = vadd.f32 %v443_v54, %v309_v58  ;;  %v528_v61 = vpop.f32.mrb[3].mxu1 }
 0x220   :  { %v314_v62 = vmax.f32 %v310_v60, 0.0  ;;  %561 = vmatprep.mubr.f32.mxu0 %v313_v59 }
 0x222   :  { %562 = vmatmul.mubr.f32.vlgmr.msra.gmra.mrb[4].mxu0 %v314_v62 }
 0x2f5   :  { %v563_v0 = vpop.f32.mrb[4].mxu0 }
 0x2f6   :  { %v410_v1 = vadd.f32 %v563_v0, %v452_v63  ;;  %v404_v2 = vpop.f32.mrb[5].mxu0 }
 0x2f7   :  { %v405_v3 = vadd.f32 %v452_v63, %v404_v2 }
 0x2f8   :  { %414 = vst [vmem:[#allocation10 + $0x8] sm:$0xff] %v410_v1 }
 0x2f9   :  { %413 = vst [vmem:[#allocation10] sm:$0xff] %v405_v3 }
 0x2fa   :  { %722 = shalt.err (!%p719_p8)
}
 0x2fb   :  { %s723_s6 = scalar_lea.hbm %s890_s7, 256 }
 0x2fc   :  { %p724_p9 = scmp.ne.s32.totalorder %s890_s7, %s723_s6  ;;  %p727_p10 = scmp.lt.u32.totalorder %s723_s6, %s890_s7 }
 0x2fe   :  { %p729_p11 = pnand %p727_p10, %p724_p9 }
 0x300   :  { %732 = shalt.err (!%p729_p11)
}
 0x301   :  { %426 = dma.vmem_to_hbm [thread:$0]  %s421_s10, 256, %s890_s7, [#allocation4], %s745_s1, %s745_s1, %s746_s25  }
 0x302   :  { %739 = dma.done.wait [#allocation4], 256  }
 0x303   :  { %740 = vsyncadd [#allocation4], 4294967040 }
 0x304   :  { %430 = vsyncpa [#allocation3], 1 }
 0x305   :  { %431 = vsyncpa [#allocation6], 1 }
 0x306   :  { %432 = vsyncpa [#allocation9], 1 }
 0x307   :  { %433 = vsyncpa [#allocation4], 1 }

</bundles_post_ra>
